<compile_context>
chip_gen: v5e
topology: v5e:2x2
jax: 0.10.0
libtpu: 0.0.40
codegen_flags: <defaults>
</compile_context>

<pallas_src>
import functools

import jax
import jax.numpy as jnp
from jax.experimental import pallas as pl
from jax.experimental.pallas import tpu as pltpu


# ---------------------------------------------------------------------------
# Kernel: one row-block of a (rows, K) @ (K, Wo) pooling matmul.
# ---------------------------------------------------------------------------
def _pool_matmul_kernel(x_ref, p_ref, o_ref, *, inv):
    # x_ref: (rb, K)   p_ref: (K, Wo) 0/1 pooling matrix   o_ref: (rb, Wo)
    # Every output row depends only on its own input row, so ragged last
    # blocks (whose padded rows read undefined data) cannot contaminate
    # valid rows; padded output rows are dropped by Pallas on writeback.
    acc = jnp.dot(x_ref[...], p_ref[...], preferred_element_type=jnp.float32)
    o_ref[...] = (acc * inv).astype(o_ref.dtype)


# ---------------------------------------------------------------------------
# VMEM sizing helpers (padded-byte model, generation aware).
# ---------------------------------------------------------------------------
def _round_up(x, m):
    return ((x + m - 1) // m) * m


def _sublane(dtype):
    return {4: 8, 2: 16, 1: 32}.get(jnp.dtype(dtype).itemsize, 8)


def _padded_bytes(shape, dtype):
    """Bytes of one VMEM buffer for `shape`, incl. (sublane, lane) padding."""
    dims = list(shape)
    if dims:
        dims[-1] = _round_up(dims[-1], 128)
    if len(dims) >= 2:
        dims[-2] = _round_up(dims[-2], _sublane(dtype))
    n = 1
    for d in dims:
        n *= d
    return n * jnp.dtype(dtype).itemsize


def _vmem_budget():
    """(total in-kernel VMEM byte budget, vmem_limit_bytes override or None)."""
    try:
        vmem = int(pltpu.get_tpu_info().vmem_capacity_bytes)
    except Exception:
        vmem = 0
    if vmem >= (96 << 20):
        # v5e / v6e: 128 MiB physical, single TensorCore -> big blocks
        # amortize the ~0.35us per-step overhead at >= 0.8 TB/s HBM BW.
        return 40 << 20, 64 << 20
    if vmem > 0:
        # v7x-class (64 MiB per TC) or smaller: mid-size blocks, explicit
        # limit well under physical.
        limit = min(44 << 20, (vmem * 3) // 4)
        return max(8 << 20, limit // 2), limit
    # Unknown generation: stay under every default scoped-VMEM limit (16 MiB
    # on v5e) without overriding vmem_limit_bytes.
    return 12 << 20, None


def _pick_row_block(n_rows, k_cols, out_cols, dtype, budget, min_steps=4):
    """Rows per grid block for the (rows, K) @ (K, out_cols) pooling matmul.

    Counts (sublane, lane) tile padding and the x2 from Pallas double
    buffering of every BlockSpec operand.  Returns either the full row count
    or a multiple of the sublane tile so BlockSpec divisibility holds.
    """
    align = _sublane(dtype)
    in_g = _padded_bytes((align, k_cols), dtype)       # one aligned input group
    out_g = _padded_bytes((align, out_cols), dtype)    # matching output group
    p_b = _padded_bytes((k_cols, out_cols), dtype)     # resident pooling matrix
    avail = max(budget - 2 * p_b, in_g + out_g)
    fit = max(1, int(avail // (2 * (in_g + out_g))))   # groups that fit
    # TODO(synk): if a single aligned row group exceeds the budget (gigantic
    # K, e.g. one huge image), tile K with a VMEM f32 accumulator and
    # pl.when init/finalize on an 'arbitrary' trailing grid axis.
    groups = int(pl.cdiv(n_rows, align))
    if fit >= groups:
        if groups >= min_steps:
            # Split into ~min_steps pipelined blocks: overlaps DMA-out of
            # block i-1 / DMA-in of block i+1 with the matmul on block i and
            # gives both v7x TensorCores grid steps on the 'parallel' axis.
            return align * int(pl.cdiv(groups, min_steps))
        return int(n_rows)
    return align * fit


# ---------------------------------------------------------------------------
# Shared pallas_call wrapper.
# ---------------------------------------------------------------------------
def _pooled_matmul(x2, pool_mat, inv, out_cols):
    rows, k_cols = x2.shape
    budget, vmem_limit = _vmem_budget()
    rb = _pick_row_block(rows, k_cols, out_cols, x2.dtype, budget)
    cp_kwargs = dict(dimension_semantics=("parallel",))
    if vmem_limit is not None:
        cp_kwargs["vmem_limit_bytes"] = int(vmem_limit)
    return pl.pallas_call(
        functools.partial(_pool_matmul_kernel, inv=inv),
        out_shape=jax.ShapeDtypeStruct((rows, out_cols), x2.dtype),
        grid=(pl.cdiv(rows, rb),),
        in_specs=[
            pl.BlockSpec((rb, k_cols), lambda i: (i, 0)),
            pl.BlockSpec((k_cols, out_cols), lambda i: (0, 0)),
        ],
        out_specs=pl.BlockSpec((rb, out_cols), lambda i: (i, 0)),
        compiler_params=pltpu.CompilerParams(**cp_kwargs),
    )(x2, pool_mat)


def _as_float(x):
    # avg-pool is a floating-point op in torch; promote anything else to f32.
    if jnp.issubdtype(x.dtype, jnp.floating):
        return x
    return x.astype(jnp.float32)


def _col_pool_matrix(k, wo, dtype):
    """(k*k*wo, wo) 0/1 matrix so that a flattened k x (k*wo) window-row
    block, right-multiplied by it, yields the k x k window sums."""
    wc = k * wo
    col_to_out = jnp.arange(wc) // k                           # (wc,)
    p = (col_to_out[:, None] == jnp.arange(wo)[None, :])       # (wc, wo)
    return jnp.tile(p.astype(dtype), (k, 1))                   # (k*wc, wo)


# ---------------------------------------------------------------------------
# Pooling paths.
# ---------------------------------------------------------------------------
def _global_avg_pool(x):
    """(N, C, H, W) -> (N, C, 1, 1): mean over the full spatial extent."""
    n, c, h, w = x.shape
    x = _as_float(x)
    x2 = x.reshape(n * c, h * w)                 # free; lane axis = H*W
    ones = jnp.ones((h * w, 1), x.dtype)
    out = _pooled_matmul(x2, ones, 1.0 / float(h * w), 1)
    return out.reshape(n, c, 1, 1)


def _window_avg_pool(x, k):
    """(N, C, H, W) -> (N, C, H//k, W//k): k x k average pool, stride k."""
    n, c, h, w = x.shape
    ho, wo = h // k, w // k
    assert ho >= 1 and wo >= 1, "pool window larger than input"
    x = _as_float(x)
    if (h, w) != (ho * k, wo * k):
        x = x[:, :, :ho * k, :wo * k]            # floor mode (stride == k)
    # The k x (k*wo) source window of every (n, c, ho) output row is
    # contiguous in NCHW memory, so this reshape is free and puts the whole
    # window on the 128-lane axis (lane-dense, no (8,128) padding blow-up).
    x2 = x.reshape(n * c * ho, k * k * wo)
    pool_mat = _col_pool_matrix(k, wo, x.dtype)
    out = _pooled_matmul(x2, pool_mat, 1.0 / float(k * k), wo)
    return out.reshape(n, c, ho, wo)


def ada_avg_pool(x, size=0):
    """Forward pass of AdaAvgPool for an NCHW input."""
    if size == -1:
        return x                                 # identity branch, no kernel
    n, c, h, w = x.shape
    if size == 0:
        # torch asserts h == w here; the global mean is well defined either
        # way, so we simply compute it (identical on the valid domain).
        return _global_avg_pool(x)
    if size >= 1:
        if size == h and size == w:
            return _global_avg_pool(x)
        return _window_avg_pool(x, size)
    raise NotImplementedError("check the avg kernel size !")


if __name__ == "__main__":
    import numpy as np

    N, C, H, W = 2, 4, 16, 16
    key = jax.random.PRNGKey(0)
    x = jax.random.normal(key, (N, C, H, W), jnp.float32)

    # size = 0 (default): global average pool -> (N, C, 1, 1)
    out0 = jax.block_until_ready(jax.jit(lambda v: ada_avg_pool(v, 0))(x))
    ref0 = jnp.mean(x, axis=(2, 3), keepdims=True)
    assert out0.shape == (N, C, 1, 1), out0.shape
    np.testing.assert_allclose(np.asarray(out0), np.asarray(ref0),
                               rtol=1e-5, atol=1e-5)

    # size = 8: 8x8 average pool, stride 8 -> (N, C, 2, 2)
    out8 = jax.block_until_ready(jax.jit(lambda v: ada_avg_pool(v, 8))(x))
    ref8 = jnp.mean(x.reshape(N, C, 2, 8, 2, 8), axis=(3, 5))
    assert out8.shape == (N, C, 2, 2), out8.shape
    np.testing.assert_allclose(np.asarray(out8), np.asarray(ref8),
                               rtol=1e-5, atol=1e-5)

    # size = 4: 4x4 average pool, stride 4 -> (N, C, 4, 4)
    out4 = jax.block_until_ready(jax.jit(lambda v: ada_avg_pool(v, 4))(x))
    ref4 = jnp.mean(x.reshape(N, C, 4, 4, 4, 4), axis=(3, 5))
    assert out4.shape == (N, C, 4, 4), out4.shape
    np.testing.assert_allclose(np.asarray(out4), np.asarray(ref4),
                               rtol=1e-5, atol=1e-5)

    # size = 16 (== H == W): routes to the global-pool kernel as well.
    out16 = jax.block_until_ready(jax.jit(lambda v: ada_avg_pool(v, 16))(x))
    np.testing.assert_allclose(np.asarray(out16), np.asarray(ref0),
                               rtol=1e-5, atol=1e-5)

    # size = -1: identity
    out_id = ada_avg_pool(x, -1)
    np.testing.assert_allclose(np.asarray(out_id), np.asarray(x))

    print("KERNEL_OK")
</pallas_src>

<mosaic_0001>
module attributes {stable_mosaic.version = 11 : i64} {
  func.func @_pool_matmul_kernel(%arg0: i32, %arg1: memref<8x256xf32, #tpu.memory_space<vmem>>, %arg2: memref<256x1xf32, #tpu.memory_space<vmem>>, %arg3: memref<8x1xf32, #tpu.memory_space<vmem>>) attributes {dimension_semantics = [#tpu.dimension_semantics<parallel>], iteration_bounds = array<i64: 1>, scalar_prefetch = 0 : i64, scratch_operands = 0 : i64, tpu.core_type = #tpu.core_type<tc>, window_params = [{transform_indices = @transform_0, window_bounds = array<i64: 8, 256>}, {pipeline_mode = #tpu.pipeline_mode<synchronous>, transform_indices = @transform_1, window_bounds = array<i64: 256, 1>}, {transform_indices = @transform_2, window_bounds = array<i64: 8, 1>}]} {
    %c0 = arith.constant 0 : index
    %c0_0 = arith.constant 0 : index
    %0 = vector.load %arg1[%c0, %c0_0] : memref<8x256xf32, #tpu.memory_space<vmem>>, vector<8x256xf32>
    %c0_1 = arith.constant 0 : index
    %c0_2 = arith.constant 0 : index
    %1 = vector.load %arg2[%c0_1, %c0_2] : memref<256x1xf32, #tpu.memory_space<vmem>>, vector<256x1xf32>
    %cst = arith.constant dense<0.000000e+00> : vector<8x1xf32>
    %2 = tpu.matmul %0, %1, %cst {dimension_numbers = #tpu.dot_dimension_numbers<[1], [0], [0], [1], [0, 0, 1, 1], [], []>} : vector<8x256xf32>, vector<256x1xf32>, vector<8x1xf32> -> vector<8x1xf32>
    %cst_3 = arith.constant 3.906250e-03 : f32
    %3 = vector.broadcast %cst_3 : f32 to vector<8x1xf32>
    %4 = arith.mulf %2, %3 : vector<8x1xf32>
    %c0_4 = arith.constant 0 : index
    %c0_5 = arith.constant 0 : index
    %5 = vector.load %arg3[%c0_4, %c0_5] : memref<8x1xf32, #tpu.memory_space<vmem>>, vector<8x1xf32>
    tpu.vector_store %arg3[%c0_4, %c0_5], %4 {strides = array<i32>} : memref<8x1xf32, #tpu.memory_space<vmem>>, vector<8x1xf32>,
    return
  }
  func.func @transform_0(%arg0: i32) -> (i32, i32) {
    %c0_i32 = arith.constant 0 : i32
    %c0_i32_0 = arith.constant 0 : i32
    return %arg0, %c0_i32 : i32, i32
  }
  func.func @transform_1(%arg0: i32) -> (i32, i32) {
    %c0_i32 = arith.constant 0 : i32
    %c0_i32_0 = arith.constant 0 : i32
    %c0_i32_1 = arith.constant 0 : i32
    return %c0_i32, %c0_i32_0 : i32, i32
  }
  func.func @transform_2(%arg0: i32) -> (i32, i32) {
    %c0_i32 = arith.constant 0 : i32
    %c0_i32_0 = arith.constant 0 : i32
    return %arg0, %c0_i32 : i32, i32
  }
}

</mosaic_0001>

<bundles_post_ra>
// kernel: _lambda_.1
= control target key start
LH: loop header
LB: loop body
LE: loop exit
PB: predicated region body
PF: predicated region fallthrough
CT: control target
= control target key end

     0   :  { %vm86_vm0 = vcmask 7168   ;;  %s212_s1 = inlined_call_operand.vmem [shape: f32[256,1], index: 1, kind: input, shape index: {}]   ;;  %s213_s0 = inlined_call_operand.vmem [shape: f32[8,256], index: 0, kind: input, shape index: {}]   ;;  %s214_s2 = inlined_call_operand.vmem [shape: f32[8,1], index: 2, kind: output, shape index: {}]  }
   0x1   :  { %v28_v0 = vld [vmem:[%s212_s1 + $0x78] sm:$0xff]  ;;  %v27_v2 = vld [vmem:[%s212_s1 + $0x70] sm:$0xff]  ;;  %v26_v4 = vld [vmem:[%s212_s1 + $0x68] sm:$0xff] }
   0x2   :  { %v44_v1 = vld [vmem:[%s212_s1 + $0xf8] sm:$0xff]  ;;  %45 = vmatpush.msra.mxu0 %v28_v0  ;;  %v43_v3 = vld [vmem:[%s212_s1 + $0xf0] sm:$0xff]  ;;  %v42_v5 = vld [vmem:[%s212_s1 + $0xe8] sm:$0xff] }
   0x3   :  { %65 = vmatpush.msra.mxu1 %v44_v1  ;;  %v25_v6 = vld [vmem:[%s212_s1 + $0x60] sm:$0xff]  ;;  %v24_v8 = vld [vmem:[%s212_s1 + $0x58] sm:$0xff]  ;;  %v23_v10 = vld [vmem:[%s212_s1 + $0x50] sm:$0xff] }
   0x4   :  { %46 = vmatpush.msra.mxu0 %v27_v2  ;;  %v41_v7 = vld [vmem:[%s212_s1 + $0xe0] sm:$0xff]  ;;  %v40_v9 = vld [vmem:[%s212_s1 + $0xd8] sm:$0xff]  ;;  %v39_v11 = vld [vmem:[%s212_s1 + $0xd0] sm:$0xff] }
   0x5   :  { %66 = vmatpush.msra.mxu1 %v43_v3  ;;  %v22_v12 = vld [vmem:[%s212_s1 + $0x48] sm:$0xff]  ;;  %v21_v14 = vld [vmem:[%s212_s1 + $0x40] sm:$0xff]  ;;  %v20_v16 = vld [vmem:[%s212_s1 + $0x38] sm:$0xff] }
   0x6   :  { %47 = vmatpush.msra.mxu0 %v26_v4  ;;  %v38_v13 = vld [vmem:[%s212_s1 + $0xc8] sm:$0xff]  ;;  %v37_v15 = vld [vmem:[%s212_s1 + $0xc0] sm:$0xff]  ;;  %v36_v17 = vld [vmem:[%s212_s1 + $0xb8] sm:$0xff] }
   0x7   :  { %67 = vmatpush.msra.mxu1 %v42_v5  ;;  %v19_v18 = vld [vmem:[%s212_s1 + $0x30] sm:$0xff]  ;;  %v18_v20 = vld [vmem:[%s212_s1 + $0x28] sm:$0xff]  ;;  %v17_v22 = vld [vmem:[%s212_s1 + $0x20] sm:$0xff] }
   0x8   :  { %48 = vmatpush.msra.mxu0 %v25_v6  ;;  %v35_v19 = vld [vmem:[%s212_s1 + $0xb0] sm:$0xff]  ;;  %v34_v21 = vld [vmem:[%s212_s1 + $0xa8] sm:$0xff]  ;;  %v33_v23 = vld [vmem:[%s212_s1 + $0xa0] sm:$0xff] }
   0x9   :  { %68 = vmatpush.msra.mxu1 %v41_v7  ;;  %v16_v24 = vld [vmem:[%s212_s1 + $0x18] sm:$0xff]  ;;  %v15_v26 = vld [vmem:[%s212_s1 + $0x10] sm:$0xff]  ;;  %v14_v28 = vld [vmem:[%s212_s1 + $0x8] sm:$0xff] }
   0xa   :  { %49 = vmatpush.msra.mxu0 %v24_v8  ;;  %v32_v25 = vld [vmem:[%s212_s1 + $0x98] sm:$0xff]  ;;  %v31_v27 = vld [vmem:[%s212_s1 + $0x90] sm:$0xff]  ;;  %v30_v29 = vld [vmem:[%s212_s1 + $0x88] sm:$0xff] }
   0xb   :  { %69 = vmatpush.msra.mxu1 %v40_v9  ;;  %v13_v30 = vld [vmem:[%s212_s1] sm:$0xff]  ;;  %v12_v33 = vld [vmem:[%s213_s0 + $0x8] sm:$0xff] }
   0xc   :  { %50 = vmatpush.msra.mxu0 %v23_v10  ;;  %v29_v31 = vld [vmem:[%s212_s1 + $0x80] sm:$0xff] }
   0xd   :  { %70 = vmatpush.msra.mxu1 %v39_v11  ;;  %v11_v32 = vld [vmem:[%s213_s0] sm:$0xff] }
   0xe   :  { %51 = vmatpush.msra.mxu0 %v22_v12 }
   0xf   :  { %71 = vmatpush.msra.mxu1 %v38_v13 }
  0x10   :  { %52 = vmatpush.msra.mxu0 %v21_v14 }
  0x11   :  { %72 = vmatpush.msra.mxu1 %v37_v15 }
  0x12   :  { %53 = vmatpush.msra.mxu0 %v20_v16 }
  0x13   :  { %73 = vmatpush.msra.mxu1 %v36_v17 }
  0x14   :  { %54 = vmatpush.msra.mxu0 %v19_v18 }
  0x15   :  { %74 = vmatpush.msra.mxu1 %v35_v19 }
  0x16   :  { %55 = vmatpush.msra.mxu0 %v18_v20 }
  0x17   :  { %75 = vmatpush.msra.mxu1 %v34_v21 }
  0x18   :  { %56 = vmatpush.msra.mxu0 %v17_v22 }
  0x19   :  { %76 = vmatpush.msra.mxu1 %v33_v23 }
  0x1a   :  { %57 = vmatpush.msra.mxu0 %v16_v24 }
  0x1b   :  { %77 = vmatpush.msra.mxu1 %v32_v25 }
  0x1c   :  { %58 = vmatpush.msra.mxu0 %v15_v26 }
  0x1d   :  { %78 = vmatpush.msra.mxu1 %v31_v27 }
  0x1e   :  { %59 = vmatpush.msra.mxu0 %v14_v28 }
  0x1f   :  { %79 = vmatpush.msra.mxu1 %v30_v29 }
  0x20   :  { %60 = vmatpush.msra.mxu0 %v13_v30 }
  0x21   :  { %80 = vmatpush.msra.mxu1 %v29_v31  ;;  %61 = vmatmul.f32.vlgmr.msra.gmra.mxu0 %v11_v32 }
  0x22   :  { %81 = vmatmul.f32.vlgmr.msra.gmra.mxu1 %v12_v33 }
  0x9e   :  { %v62_v34 = vpop.f32.mrf.mxu0 }
  0x9f   :  { %v82_v35 = vpop.f32.mrf.mxu1 }
  0xa0   :  { %v83_v36 = vadd.f32 %v82_v35, %v62_v34 }
  0xa2   :  { %v85_v37 = vmul.f32 0.00390625, %v83_v36 }
  0xa4   :  { %87 = vst.msk [vmem:[%s214_s2] sm:$0xff] %vm86_vm0, %v85_v37 }

</bundles_post_ra>
